<compile_context>
chip_gen: v6e
topology: v6e:2x2x1
jax: 0.10.0
libtpu: 0.0.40
codegen_flags: <defaults>
</compile_context>

<pallas_src>
import functools

import jax
import jax.numpy as jnp
from jax import lax
from jax.experimental import pallas as pl
from jax.experimental.pallas import tpu as pltpu

_MIB = 1024 * 1024


def _device_budgets():
    """Generation-aware VMEM budgets (v5e/v6e: 128 MiB VMEM; v7x: 64 MiB per TC)."""
    try:
        cap = int(getattr(pltpu.get_tpu_info(), "vmem_capacity_bytes", 64 * _MIB))
    except Exception:  # conservative fallback if the query is unavailable
        cap = 64 * _MIB
    if cap >= 100 * _MIB:      # v5e / v6e class parts: widen the fused window (1 HBM read)
        return dict(vmem_limit=96 * _MIB, fused_max=32 * _MIB, fused_tile=2 * _MIB,
                    stats_tile=8 * _MIB, norm_tile=8 * _MIB)
    # v7x: tighter VMEM, very fast HBM -> keep fused small, prefer the 2-TC streaming path.
    return dict(vmem_limit=40 * _MIB, fused_max=8 * _MIB, fused_tile=1 * _MIB,
                stats_tile=8 * _MIB, norm_tile=6 * _MIB)


def _sublane_quantum(itemsize):
    return 8 * max(1, 4 // max(1, itemsize))


def _padded_block_bytes(shape, itemsize):
    """Conservative VMEM footprint of a block (sublane/lane tile padding included)."""
    dims = list(shape)
    if len(dims) >= 2:
        q = _sublane_quantum(itemsize)
        dims[-2] = -(-dims[-2] // q) * q
    dims[-1] = -(-dims[-1] // 128) * 128
    n = 1
    for d in dims:
        n *= d
    return n * itemsize


def _largest_divisor_tile(total, quantum, cap):
    """Largest multiple of `quantum` dividing `total` and <= cap (None if none exists)."""
    t = min(total, max(quantum, (cap // quantum) * quantum))
    t = (t // quantum) * quantum
    while t >= quantum:
        if total % t == 0:
            return t
        t -= quantum
    return None


# --------------------------- fused (single HBM read) path ---------------------------

def _fused_bn_kernel(x_ref, g_ref, b_ref, o_ref,
                     xbuf, rsum, rsumsq, sc_ref, sh_ref,
                     *, n_tiles, hw_tile, inv_count, eps):
    p = pl.program_id(0)          # phase: 0 = gather stats, 1 = normalize
    t = pl.program_id(1)          # H*W tile

    if n_tiles == 1:
        idx = (slice(None), slice(None), slice(None))
    else:
        off = pl.multiple_of(t * hw_tile, 128)
        idx = (slice(None), slice(None), pl.ds(off, hw_tile))

    @pl.when(p == 0)
    def _():
        @pl.when(t == 0)
        def _():
            rsum[...] = jnp.zeros_like(rsum)
            rsumsq[...] = jnp.zeros_like(rsumsq)
        xt = x_ref[...]                                   # (N, C, hw_tile), x dtype
        xbuf[idx] = xt                                    # keep x resident in VMEM
        xf = xt.astype(jnp.float32)
        rsum[...] += jnp.sum(xf, axis=(0, 2), keepdims=True)
        rsumsq[...] += jnp.sum(xf * xf, axis=(0, 2), keepdims=True)

    @pl.when(jnp.logical_and(p == 1, t == 0))
    def _():
        mean = rsum[...] * inv_count                      # (1, C, 1)
        # TODO(synk): E[x^2]-E[x]^2 can cancel when |mean| >> std; clamp guards rsqrt.
        var = jnp.maximum(rsumsq[...] * inv_count - mean * mean, 0.0)
        sc = g_ref[...] * lax.rsqrt(var + eps)
        sc_ref[...] = sc
        sh_ref[...] = b_ref[...] - mean * sc

    @pl.when(p == 1)
    def _():
        xf = xbuf[idx].astype(jnp.float32)
        o_ref[...] = (xf * sc_ref[...] + sh_ref[...]).astype(o_ref.dtype)


def _fused_path(x3d, gamma3d, beta3d, eps, hw_tile, vmem_limit):
    N, C, HW = x3d.shape
    n_t = HW // hw_tile
    n_last = n_t - 1
    kern = functools.partial(_fused_bn_kernel, n_tiles=n_t, hw_tile=hw_tile,
                             inv_count=1.0 / float(N * HW), eps=float(eps))
    # Phase 0 reads tile t; phase 1 pins the input index (no re-read) and streams output
    # tiles. The output block index stays constant through phase 0, so no garbage writeback.
    return pl.pallas_call(
        kern,
        out_shape=jax.ShapeDtypeStruct((N, C, HW), x3d.dtype),
        grid=(2, n_t),
        in_specs=[pl.BlockSpec((N, C, hw_tile),
                               lambda p, t: (0, 0, t * (1 - p) + n_last * p)),
                  pl.BlockSpec((1, C, 1), lambda p, t: (0, 0, 0)),
                  pl.BlockSpec((1, C, 1), lambda p, t: (0, 0, 0))],
        out_specs=pl.BlockSpec((N, C, hw_tile), lambda p, t: (0, 0, t * p)),
        scratch_shapes=[pltpu.VMEM((N, C, HW), x3d.dtype),      # resident copy of x
                        pltpu.VMEM((1, C, 1), jnp.float32),     # sum
                        pltpu.VMEM((1, C, 1), jnp.float32),     # sum of squares
                        pltpu.VMEM((1, C, 1), jnp.float32),     # scale
                        pltpu.VMEM((1, C, 1), jnp.float32)],    # shift
        compiler_params=pltpu.CompilerParams(
            dimension_semantics=("arbitrary", "arbitrary"),
            vmem_limit_bytes=vmem_limit),
    )(x3d, gamma3d, beta3d)


# --------------------------- two-pass streaming path ---------------------------

def _stats_kernel(x_ref, sum_ref, sumsq_ref):
    """Per-row (row = one (n, c) pair) partial sum / sum-of-squares over H*W tiles."""
    @pl.when(pl.program_id(1) == 0)
    def _():
        sum_ref[...] = jnp.zeros_like(sum_ref)
        sumsq_ref[...] = jnp.zeros_like(sumsq_ref)
    xf = x_ref[...].astype(jnp.float32)                   # (r_blk, hw_tile)
    sum_ref[...] += jnp.sum(xf, axis=1, keepdims=True)
    sumsq_ref[...] += jnp.sum(xf * xf, axis=1, keepdims=True)
    # TODO(synk): on v7x accumulate into a (r_blk, 128) lane-wise scratch and do the
    # cross-lane reduction once at the last tile to stay on the HBM roofline.


def _normalize_kernel(x_ref, scale_ref, shift_ref, o_ref):
    """y = x * scale + shift with precomputed per-row scale / shift."""
    xf = x_ref[...].astype(jnp.float32)                   # (r_blk, hw_tile)
    o_ref[...] = (xf * scale_ref[...] + shift_ref[...]).astype(o_ref.dtype)


# --------------------------- public wrapper ---------------------------

def shared_batch_norm_2d(x_nchw, weight, bias, *, eps=1e-5,
                         fused_bytes_max=None, fused_tile_bytes=None,
                         stats_tile_bytes=None, norm_tile_bytes=None):
    """Forward pass of SharedBatchNorm2d (training-mode batch norm) via Pallas TPU."""
    budgets = _device_budgets()
    fused_bytes_max = budgets["fused_max"] if fused_bytes_max is None else fused_bytes_max
    fused_tile_bytes = budgets["fused_tile"] if fused_tile_bytes is None else fused_tile_bytes
    stats_tile_bytes = budgets["stats_tile"] if stats_tile_bytes is None else stats_tile_bytes
    norm_tile_bytes = budgets["norm_tile"] if norm_tile_bytes is None else norm_tile_bytes
    vmem_limit = budgets["vmem_limit"]

    N, C, H, W = x_nchw.shape
    HW = H * W
    R = N * C
    count = N * HW
    itemsize = jnp.dtype(x_nchw.dtype).itemsize
    row_q = _sublane_quantum(itemsize)
    lane_ok = (HW % 128 == 0)

    # Slimmable slicing: only the first C entries of the (possibly wider) parameters.
    gamma = weight[:C].astype(jnp.float32)
    beta = bias[:C].astype(jnp.float32)

    # ---------------- fused pipelined path (x resident in VMEM, single HBM read) --------
    if lane_ok:
        cpad = -(-C // row_q) * row_q
        lane_cap = max(128, fused_tile_bytes // max(1, N * cpad * itemsize))
        f_hw = _largest_divisor_tile(HW, 128, lane_cap) or 128
    else:
        # Ragged H*W: full-extent lane block (masked stores only matter for tiny tensors).
        f_hw = HW

    xbuf_bytes = _padded_block_bytes((N, C, HW), itemsize)
    f_blk_bytes = _padded_block_bytes((N, C, f_hw), itemsize)
    fused_vmem = xbuf_bytes + 4 * f_blk_bytes + 2 * _MIB   # scratch + 2x double-buffered i/o
    use_fused = (xbuf_bytes <= fused_bytes_max) and (fused_vmem <= int(0.85 * vmem_limit))

    if use_fused:
        x3d = x_nchw.reshape(N, C, HW)                     # pure reshape, no transpose
        out3d = _fused_path(x3d, gamma.reshape(1, C, 1), beta.reshape(1, C, 1),
                            eps, f_hw, vmem_limit)
        return out3d.reshape(N, C, H, W)

    # ---------------- two-pass streaming path (2-D (N*C, H*W) layout) ----------------
    x2d = x_nchw.reshape(R, HW)                            # pure reshape; rows fill sublanes

    def plan(target_bytes):
        if lane_ok:
            lane_cap = max(128, target_bytes // max(1, row_q * itemsize))
            hw_t = _largest_divisor_tile(HW, 128, lane_cap) or 128
        else:
            hw_t = HW   # TODO(synk): for huge ragged H*W, (R, H, W) blocks would bound VMEM
        r_cap = max(row_q, target_bytes // max(1, hw_t * itemsize))
        r_blk = _largest_divisor_tile(R, row_q, r_cap)
        if r_blk is None:
            r_blk = R   # full row extent (always a legal block)
            if lane_ok:
                lane_cap = max(128, (2 * target_bytes) // max(1, R * itemsize))
                hw_t = _largest_divisor_tile(HW, 128, lane_cap) or 128
        return r_blk, hw_t

    # Pass 1: per-row partial sums. Row axis "parallel" (both v7x TCs even when N == 1),
    # H*W axis is the trailing "arbitrary" reduction axis.
    r1, t1 = plan(stats_tile_bytes)
    rowsum, rowsumsq = pl.pallas_call(
        _stats_kernel,
        out_shape=(jax.ShapeDtypeStruct((R, 1), jnp.float32),
                   jax.ShapeDtypeStruct((R, 1), jnp.float32)),
        grid=(R // r1, HW // t1),
        in_specs=[pl.BlockSpec((r1, t1), lambda r, t: (r, t))],
        out_specs=(pl.BlockSpec((r1, 1), lambda r, t: (r, 0)),
                   pl.BlockSpec((r1, 1), lambda r, t: (r, 0))),
        compiler_params=pltpu.CompilerParams(
            dimension_semantics=("parallel", "arbitrary"),
            vmem_limit_bytes=vmem_limit),
    )(x2d)

    # Fold the tiny per-row partials into per-channel scale/shift once (negligible XLA ops).
    ch_sum = jnp.sum(rowsum.reshape(N, C), axis=0)
    ch_sumsq = jnp.sum(rowsumsq.reshape(N, C), axis=0)
    mean = ch_sum / count
    # TODO(synk): E[x^2]-E[x]^2 can cancel when |mean| >> std; clamp guards rsqrt.
    var = jnp.maximum(ch_sumsq / count - mean * mean, 0.0)
    sc = gamma * lax.rsqrt(var + float(eps))               # (C,)
    sh = beta - mean * sc
    scale_rows = jnp.tile(sc, N).reshape(R, 1)              # row n*C + c -> channel c
    shift_rows = jnp.tile(sh, N).reshape(R, 1)

    # Pass 2: fully parallel streaming fused multiply-add.
    r2, t2 = plan(norm_tile_bytes)
    out2d = pl.pallas_call(
        _normalize_kernel,
        out_shape=jax.ShapeDtypeStruct((R, HW), x2d.dtype),
        grid=(R // r2, HW // t2),
        in_specs=[pl.BlockSpec((r2, t2), lambda r, t: (r, t)),
                  pl.BlockSpec((r2, 1), lambda r, t: (r, 0)),
                  pl.BlockSpec((r2, 1), lambda r, t: (r, 0))],
        out_specs=pl.BlockSpec((r2, t2), lambda r, t: (r, t)),
        compiler_params=pltpu.CompilerParams(
            dimension_semantics=("parallel", "parallel"),
            vmem_limit_bytes=vmem_limit),
    )(x2d, scale_rows, shift_rows)
    return out2d.reshape(N, C, H, W)


# --------------------------- reference + tests ---------------------------

def _reference_batch_norm(x_nchw, weight, bias, eps=1e-5):
    C = x_nchw.shape[1]
    xf = x_nchw.astype(jnp.float32)
    mean = jnp.mean(xf, axis=(0, 2, 3), keepdims=True)
    var = jnp.mean((xf - mean) ** 2, axis=(0, 2, 3), keepdims=True)
    g = weight[:C].astype(jnp.float32).reshape(1, C, 1, 1)
    b = bias[:C].astype(jnp.float32).reshape(1, C, 1, 1)
    return (xf - mean) * lax.rsqrt(var + eps) * g + b


if __name__ == "__main__":
    key = jax.random.PRNGKey(0)
    kx, kg, kb, kx2, kx3, kx4 = jax.random.split(key, 6)

    # 1) fused path, single H*W tile (the module's natural small shape).
    N, C, H, W = 2, 4, 16, 16
    x = jax.random.normal(kx, (N, C, H, W), jnp.float32) * 2.0 + 0.5
    w = 1.0 + 0.1 * jax.random.normal(kg, (C,), jnp.float32)
    b = 0.1 * jax.random.normal(kb, (C,), jnp.float32)
    out = jax.block_until_ready(shared_batch_norm_2d(x, w, b, eps=1e-5))
    ref = _reference_batch_norm(x, w, b, eps=1e-5)
    assert out.shape == (N, C, H, W)
    assert jnp.allclose(out, ref, atol=1e-3, rtol=1e-3), "fused path mismatch vs reference"

    # 2) fused path with multiple H*W tiles (exercises the 2-phase pipeline + VMEM scratch).
    N2, C2, H2, W2 = 2, 8, 16, 16
    x2 = jax.random.normal(kx2, (N2, C2, H2, W2), jnp.float32) * 1.5 - 0.3
    w2 = 1.0 + 0.1 * jax.random.normal(kg, (C2,), jnp.float32)
    b2 = 0.1 * jax.random.normal(kb, (C2,), jnp.float32)
    out2 = jax.block_until_ready(
        shared_batch_norm_2d(x2, w2, b2, fused_tile_bytes=N2 * C2 * 128 * 4))
    ref2 = _reference_batch_norm(x2, w2, b2)
    assert jnp.allclose(out2, ref2, atol=1e-3, rtol=1e-3), "fused multi-tile mismatch"

    # 3) two-pass streaming path (forced) with row + lane tiling and accumulation.
    N3, C3, H3, W3 = 2, 8, 32, 32
    x3 = jax.random.normal(kx3, (N3, C3, H3, W3), jnp.float32) * 1.5 - 0.3
    w3 = 1.0 + 0.1 * jax.random.normal(kg, (C3,), jnp.float32)
    b3 = 0.1 * jax.random.normal(kb, (C3,), jnp.float32)
    out3 = jax.block_until_ready(
        shared_batch_norm_2d(x3, w3, b3, fused_bytes_max=0,
                             stats_tile_bytes=8 * 256 * 4,
                             norm_tile_bytes=8 * 256 * 4))
    ref3 = _reference_batch_norm(x3, w3, b3)
    assert jnp.allclose(out3, ref3, atol=1e-3, rtol=1e-3), "two-pass path mismatch"

    # 4) ragged H*W (not a multiple of 128) -> full-extent lane blocks, no padding copy.
    N4, C4, H4, W4 = 2, 4, 6, 6
    x4 = jax.random.normal(kx4, (N4, C4, H4, W4), jnp.float32) + 0.2
    out4 = jax.block_until_ready(shared_batch_norm_2d(x4, w, b))
    ref4 = _reference_batch_norm(x4, w, b)
    assert jnp.allclose(out4, ref4, atol=1e-3, rtol=1e-3), "ragged-HW mismatch"

    # 5) bf16 input through the two-pass path (dtype-aware tiling, f32 accumulation).
    xb = x3.astype(jnp.bfloat16)
    outb = jax.block_until_ready(
        shared_batch_norm_2d(xb, w3, b3, fused_bytes_max=0,
                             stats_tile_bytes=16 * 256 * 2,
                             norm_tile_bytes=16 * 256 * 2))
    refb = _reference_batch_norm(xb, w3, b3)
    assert outb.dtype == jnp.bfloat16
    assert jnp.allclose(outb.astype(jnp.float32), refb, atol=3e-2, rtol=3e-2), "bf16 mismatch"

    print("KERNEL_OK")
</pallas_src>

<mosaic_0001>
module attributes {stable_mosaic.version = 11 : i64} {
  func.func @_fused_bn_kernel(%arg0: i32, %arg1: i32, %arg2: memref<2x4x256xf32, #tpu.memory_space<vmem>>, %arg3: memref<1x4x1xf32, #tpu.memory_space<vmem>>, %arg4: memref<1x4x1xf32, #tpu.memory_space<vmem>>, %arg5: memref<2x4x256xf32, #tpu.memory_space<vmem>>, %arg6: memref<2x4x256xf32, #tpu.memory_space<vmem>>, %arg7: memref<1x4x1xf32, #tpu.memory_space<vmem>>, %arg8: memref<1x4x1xf32, #tpu.memory_space<vmem>>, %arg9: memref<1x4x1xf32, #tpu.memory_space<vmem>>, %arg10: memref<1x4x1xf32, #tpu.memory_space<vmem>>) attributes {dimension_semantics = [#tpu.dimension_semantics<arbitrary>, #tpu.dimension_semantics<arbitrary>], iteration_bounds = array<i64: 2, 1>, scalar_prefetch = 0 : i64, scratch_operands = 5 : i64, tpu.core_type = #tpu.core_type<tc>, window_params = [{transform_indices = @transform_0, window_bounds = array<i64: 2, 4, 256>}, {pipeline_mode = #tpu.pipeline_mode<synchronous>, transform_indices = @transform_1, window_bounds = array<i64: 1, 4, 1>}, {pipeline_mode = #tpu.pipeline_mode<synchronous>, transform_indices = @transform_2, window_bounds = array<i64: 1, 4, 1>}, {transform_indices = @transform_3, window_bounds = array<i64: 2, 4, 256>}]} {
    %c0_i32 = arith.constant 0 : i32
    %0 = arith.cmpi eq, %arg0, %c0_i32 : i32
    %1 = arith.extui %0 : i1 to i32
    %c0_i32_0 = arith.constant 0 : i32
    %2 = arith.cmpi ne, %1, %c0_i32_0 : i32
    scf.if %2 {
      %c0_i32_5 = arith.constant 0 : i32
      %11 = arith.cmpi eq, %arg1, %c0_i32_5 : i32
      %12 = arith.extui %11 : i1 to i32
      %c0_i32_6 = arith.constant 0 : i32
      %13 = arith.cmpi ne, %12, %c0_i32_6 : i32
      scf.if %13 {
        %cst_25 = arith.constant 0.000000e+00 : f32
        %27 = vector.broadcast %cst_25 : f32 to vector<1x4x1xf32>
        %c0_26 = arith.constant 0 : index
        %c0_27 = arith.constant 0 : index
        %c0_28 = arith.constant 0 : index
        %28 = vector.load %arg7[%c0_26, %c0_27, %c0_28] : memref<1x4x1xf32, #tpu.memory_space<vmem>>, vector<1x4x1xf32>
        tpu.vector_store %arg7[%c0_26, %c0_27, %c0_28], %27 {strides = array<i32>} : memref<1x4x1xf32, #tpu.memory_space<vmem>>, vector<1x4x1xf32>,
        %cst_29 = arith.constant 0.000000e+00 : f32
        %29 = vector.broadcast %cst_29 : f32 to vector<1x4x1xf32>
        %c0_30 = arith.constant 0 : index
        %c0_31 = arith.constant 0 : index
        %c0_32 = arith.constant 0 : index
        %30 = vector.load %arg8[%c0_30, %c0_31, %c0_32] : memref<1x4x1xf32, #tpu.memory_space<vmem>>, vector<1x4x1xf32>
        tpu.vector_store %arg8[%c0_30, %c0_31, %c0_32], %29 {strides = array<i32>} : memref<1x4x1xf32, #tpu.memory_space<vmem>>, vector<1x4x1xf32>,
      } else {
      }
      %c0 = arith.constant 0 : index
      %c0_7 = arith.constant 0 : index
      %c0_8 = arith.constant 0 : index
      %14 = vector.load %arg2[%c0, %c0_7, %c0_8] : memref<2x4x256xf32, #tpu.memory_space<vmem>>, vector<2x4x256xf32>
      %c0_9 = arith.constant 0 : index
      %c0_10 = arith.constant 0 : index
      %c0_11 = arith.constant 0 : index
      %15 = vector.load %arg6[%c0_9, %c0_10, %c0_11] : memref<2x4x256xf32, #tpu.memory_space<vmem>>, vector<2x4x256xf32>
      tpu.vector_store %arg6[%c0_9, %c0_10, %c0_11], %14 {strides = array<i32>} : memref<2x4x256xf32, #tpu.memory_space<vmem>>, vector<2x4x256xf32>,
      %c0_12 = arith.constant 0 : index
      %c0_13 = arith.constant 0 : index
      %c0_14 = arith.constant 0 : index
      %16 = vector.load %arg7[%c0_12, %c0_13, %c0_14] : memref<1x4x1xf32, #tpu.memory_space<vmem>>, vector<1x4x1xf32>
      %cst = arith.constant dense<0.000000e+00> : vector<4xf32>
      %17 = vector.multi_reduction <add>, %14, %cst [0, 2] : vector<2x4x256xf32> to vector<4xf32>
      %18 = vector.shape_cast %17 : vector<4xf32> to vector<1x4x1xf32>
      %19 = arith.addf %16, %18 : vector<1x4x1xf32>
      %c0_15 = arith.constant 0 : index
      %c0_16 = arith.constant 0 : index
      %c0_17 = arith.constant 0 : index
      %20 = vector.load %arg7[%c0_15, %c0_16, %c0_17] : memref<1x4x1xf32, #tpu.memory_space<vmem>>, vector<1x4x1xf32>
      tpu.vector_store %arg7[%c0_15, %c0_16, %c0_17], %19 {strides = array<i32>} : memref<1x4x1xf32, #tpu.memory_space<vmem>>, vector<1x4x1xf32>,
      %c0_18 = arith.constant 0 : index
      %c0_19 = arith.constant 0 : index
      %c0_20 = arith.constant 0 : index
      %21 = vector.load %arg8[%c0_18, %c0_19, %c0_20] : memref<1x4x1xf32, #tpu.memory_space<vmem>>, vector<1x4x1xf32>
      %22 = arith.mulf %14, %14 : vector<2x4x256xf32>
      %cst_21 = arith.constant dense<0.000000e+00> : vector<4xf32>
      %23 = vector.multi_reduction <add>, %22, %cst_21 [0, 2] : vector<2x4x256xf32> to vector<4xf32>
      %24 = vector.shape_cast %23 : vector<4xf32> to vector<1x4x1xf32>
      %25 = arith.addf %21, %24 : vector<1x4x1xf32>
      %c0_22 = arith.constant 0 : index
      %c0_23 = arith.constant 0 : index
      %c0_24 = arith.constant 0 : index
      %26 = vector.load %arg8[%c0_22, %c0_23, %c0_24] : memref<1x4x1xf32, #tpu.memory_space<vmem>>, vector<1x4x1xf32>
      tpu.vector_store %arg8[%c0_22, %c0_23, %c0_24], %25 {strides = array<i32>} : memref<1x4x1xf32, #tpu.memory_space<vmem>>, vector<1x4x1xf32>,
    } else {
    }
    %c1_i32 = arith.constant 1 : i32
    %3 = arith.cmpi eq, %arg0, %c1_i32 : i32
    %c0_i32_1 = arith.constant 0 : i32
    %4 = arith.cmpi eq, %arg1, %c0_i32_1 : i32
    %5 = arith.andi %3, %4 : i1
    %6 = arith.extui %5 : i1 to i32
    %c0_i32_2 = arith.constant 0 : i32
    %7 = arith.cmpi ne, %6, %c0_i32_2 : i32
    scf.if %7 {
      %c0 = arith.constant 0 : index
      %c0_5 = arith.constant 0 : index
      %c0_6 = arith.constant 0 : index
      %11 = vector.load %arg7[%c0, %c0_5, %c0_6] : memref<1x4x1xf32, #tpu.memory_space<vmem>>, vector<1x4x1xf32>
      %cst = arith.constant 0.001953125 : f32
      %12 = vector.broadcast %cst : f32 to vector<1x4x1xf32>
      %13 = arith.mulf %11, %12 : vector<1x4x1xf32>
      %c0_7 = arith.constant 0 : index
      %c0_8 = arith.constant 0 : index
      %c0_9 = arith.constant 0 : index
      %14 = vector.load %arg8[%c0_7, %c0_8, %c0_9] : memref<1x4x1xf32, #tpu.memory_space<vmem>>, vector<1x4x1xf32>
      %cst_10 = arith.constant 0.001953125 : f32
      %15 = vector.broadcast %cst_10 : f32 to vector<1x4x1xf32>
      %16 = arith.mulf %14, %15 : vector<1x4x1xf32>
      %17 = arith.mulf %13, %13 : vector<1x4x1xf32>
      %18 = arith.subf %16, %17 : vector<1x4x1xf32>
      %cst_11 = arith.constant 0.000000e+00 : f32
      %19 = vector.broadcast %cst_11 : f32 to vector<1x4x1xf32>
      %20 = arith.maximumf %18, %19 : vector<1x4x1xf32>
      %c0_12 = arith.constant 0 : index
      %c0_13 = arith.constant 0 : index
      %c0_14 = arith.constant 0 : index
      %21 = vector.load %arg3[%c0_12, %c0_13, %c0_14] : memref<1x4x1xf32, #tpu.memory_space<vmem>>, vector<1x4x1xf32>
      %cst_15 = arith.constant 9.99999974E-6 : f32
      %22 = vector.broadcast %cst_15 : f32 to vector<1x4x1xf32>
      %23 = arith.addf %20, %22 : vector<1x4x1xf32>
      %24 = math.rsqrt %23 : vector<1x4x1xf32>
      %25 = arith.mulf %21, %24 : vector<1x4x1xf32>
      %c0_16 = arith.constant 0 : index
      %c0_17 = arith.constant 0 : index
      %c0_18 = arith.constant 0 : index
      %26 = vector.load %arg9[%c0_16, %c0_17, %c0_18] : memref<1x4x1xf32, #tpu.memory_space<vmem>>, vector<1x4x1xf32>
      tpu.vector_store %arg9[%c0_16, %c0_17, %c0_18], %25 {strides = array<i32>} : memref<1x4x1xf32, #tpu.memory_space<vmem>>, vector<1x4x1xf32>,
      %c0_19 = arith.constant 0 : index
      %c0_20 = arith.constant 0 : index
      %c0_21 = arith.constant 0 : index
      %27 = vector.load %arg4[%c0_19, %c0_20, %c0_21] : memref<1x4x1xf32, #tpu.memory_space<vmem>>, vector<1x4x1xf32>
      %28 = arith.mulf %13, %25 : vector<1x4x1xf32>
      %29 = arith.subf %27, %28 : vector<1x4x1xf32>
      %c0_22 = arith.constant 0 : index
      %c0_23 = arith.constant 0 : index
      %c0_24 = arith.constant 0 : index
      %30 = vector.load %arg10[%c0_22, %c0_23, %c0_24] : memref<1x4x1xf32, #tpu.memory_space<vmem>>, vector<1x4x1xf32>
      tpu.vector_store %arg10[%c0_22, %c0_23, %c0_24], %29 {strides = array<i32>} : memref<1x4x1xf32, #tpu.memory_space<vmem>>, vector<1x4x1xf32>,
    } else {
    }
    %c1_i32_3 = arith.constant 1 : i32
    %8 = arith.cmpi eq, %arg0, %c1_i32_3 : i32
    %9 = arith.extui %8 : i1 to i32
    %c0_i32_4 = arith.constant 0 : i32
    %10 = arith.cmpi ne, %9, %c0_i32_4 : i32
    scf.if %10 {
      %c0 = arith.constant 0 : index
      %c0_5 = arith.constant 0 : index
      %c0_6 = arith.constant 0 : index
      %11 = vector.load %arg6[%c0, %c0_5, %c0_6] : memref<2x4x256xf32, #tpu.memory_space<vmem>>, vector<2x4x256xf32>
      %c0_7 = arith.constant 0 : index
      %c0_8 = arith.constant 0 : index
      %c0_9 = arith.constant 0 : index
      %12 = vector.load %arg9[%c0_7, %c0_8, %c0_9] : memref<1x4x1xf32, #tpu.memory_space<vmem>>, vector<1x4x1xf32>
      %13 = vector.broadcast %12 : vector<1x4x1xf32> to vector<2x4x256xf32>
      %14 = arith.mulf %11, %13 : vector<2x4x256xf32>
      %c0_10 = arith.constant 0 : index
      %c0_11 = arith.constant 0 : index
      %c0_12 = arith.constant 0 : index
      %15 = vector.load %arg10[%c0_10, %c0_11, %c0_12] : memref<1x4x1xf32, #tpu.memory_space<vmem>>, vector<1x4x1xf32>
      %16 = vector.broadcast %15 : vector<1x4x1xf32> to vector<2x4x256xf32>
      %17 = arith.addf %14, %16 : vector<2x4x256xf32>
      %c0_13 = arith.constant 0 : index
      %c0_14 = arith.constant 0 : index
      %c0_15 = arith.constant 0 : index
      %18 = vector.load %arg5[%c0_13, %c0_14, %c0_15] : memref<2x4x256xf32, #tpu.memory_space<vmem>>, vector<2x4x256xf32>
      tpu.vector_store %arg5[%c0_13, %c0_14, %c0_15], %17 {strides = array<i32>} : memref<2x4x256xf32, #tpu.memory_space<vmem>>, vector<2x4x256xf32>,
    } else {
    }
    return
  }
  func.func @transform_0(%arg0: i32, %arg1: i32) -> (i32, i32, i32) {
    %c1_i32 = arith.constant 1 : i32
    %0 = arith.subi %c1_i32, %arg0 : i32
    %1 = arith.muli %arg1, %0 : i32
    %c0_i32 = arith.constant 0 : i32
    %2 = arith.muli %c0_i32, %arg0 : i32
    %3 = arith.addi %1, %2 : i32
    %c0_i32_0 = arith.constant 0 : i32
    %c0_i32_1 = arith.constant 0 : i32
    %c0_i32_2 = arith.constant 0 : i32
    return %c0_i32_0, %c0_i32_1, %3 : i32, i32, i32
  }
  func.func @transform_1(%arg0: i32, %arg1: i32) -> (i32, i32, i32) {
    %c0_i32 = arith.constant 0 : i32
    %c0_i32_0 = arith.constant 0 : i32
    %c0_i32_1 = arith.constant 0 : i32
    %c0_i32_2 = arith.constant 0 : i32
    return %c0_i32, %c0_i32_0, %c0_i32_1 : i32, i32, i32
  }
  func.func @transform_2(%arg0: i32, %arg1: i32) -> (i32, i32, i32) {
    %c0_i32 = arith.constant 0 : i32
    %c0_i32_0 = arith.constant 0 : i32
    %c0_i32_1 = arith.constant 0 : i32
    %c0_i32_2 = arith.constant 0 : i32
    return %c0_i32, %c0_i32_0, %c0_i32_1 : i32, i32, i32
  }
  func.func @transform_3(%arg0: i32, %arg1: i32) -> (i32, i32, i32) {
    %0 = arith.muli %arg1, %arg0 : i32
    %c0_i32 = arith.constant 0 : i32
    %c0_i32_0 = arith.constant 0 : i32
    %c0_i32_1 = arith.constant 0 : i32
    return %c0_i32, %c0_i32_0, %0 : i32, i32, i32
  }
}

</mosaic_0001>

<bundles_post_ra>
// kernel: tpu_custom_call.1
= control target key start
LH: loop header
LB: loop body
LE: loop exit
PB: predicated region body
PF: predicated region fallthrough
CT: control target
= control target key end

     0   :  { %8 = vsyncpa [#allocation8], 0  ;;  %s694_s0 = inlined_call_operand.hbm [shape: f32[2,4,256], index: 0, kind: input, shape index: {}]   ;;  %s695_s1 = inlined_call_operand.vmem [shape: f32[1,4,1], index: 1, kind: input, shape index: {}]   ;;  %s696_s2 = inlined_call_operand.vmem [shape: f32[1,4,1], index: 2, kind: input, shape index: {}]   ;;  %s697_s3 = inlined_call_operand.hbm [shape: f32[2,4,256], index: 3, kind: output, shape index: {}]  }
   0x1   :  { %10 = vsyncpa [#allocation8 + $0x1], 0 }
   0x2   :  { %11 = vsyncpa [#allocation9], 0 }
   0x3   :  { %13 = vsyncpa [#allocation9 + $0x1], 0  ;;  %s611_s12 = smov 0   ;;  %s613_s13 = smov 0  }
   0x4   :  { %s615_s14 = smov 0  }
   0x5 LB: > { %s425_s15 = sadd.s32 4294967295, %s580_s14   ;;  %s426_s16 = sadd.s32 4294967294, %s580_s14   ;;  %s580_s14 = sphi %s615_s14, %s19_s14   ;;  %s576_s13 = sphi %s613_s13, %s701_s13   ;;  %s572_s12 = sphi %s611_s12, %s700_s12  }
   0x6   : > { %s31_s17 = sadd.s32 1, %s576_s13  ;;  %p428_p0 = scmp.ge.s32.totalorder %s580_s14, 2 }
   0x7   : > { %p33_p1 = scmp.ge.s32.totalorder %s31_s17, 2  ;;  %p456_p2 = scmp.lt.s32.totalorder %s580_s14, 2 }
   0x8   : > { %p457_p3 = scmp.eq.s32.totalorder %s580_s14, 0  ;;  %s582_s19 = smov [#allocation7]  }
   0x9   : > { %s703_s17 = smov (%p33_p1, %s31_s17), 0  ;;  %s168_s20 = sshll.u32 %s582_s19, 4  ;;  %s169_s20 = int_to_ptr.vmem [resolvable:$true] %s168_s20 }
   0xa   : > { %p634_p4 = pnand %p457_p3, %p456_p2  ;;  %p430_p5 = scmp.ge.s32.totalorder %s580_s14, 1 }
   0xb   : > { %s511_s21 = scalar_lea.vmem %s169_s20, 256  ;;  %s518_s22 = scalar_lea.vmem %s169_s20, 512 }
   0xc   : > { %p502_p6 = pneg %p634_p4  ;;  %p512_p7 = scmp.ne.s32.totalorder %s169_s20, %s511_s21 }
   0xd   : > { %p519_p10 = scmp.lt.s32.totalorder %s169_s20, %s169_s20  ;;  %p520_p11 = scmp.lt.s32.totalorder %s518_s22, %s511_s21 }
   0xe   : > { %p514_p8 = pnand %p512_p7, %p502_p6 }
   0xf   : > { %p521_p12 = por %p520_p11, %p519_p10 }
  0x10   : > { %p515_p9 = pneg %p514_p8 }
  0x12   : > { %p522_p13 = pnand %p521_p12, %p515_p9 }
  0x14   : > { %525 = shalt.err (!%p522_p13)
}
  0x15   : > { %s583_s23 = smov 128   ;;  %s584_s24 = smov 8  }
  0x16   : > { %451 = dma.hbm_to_vmem [thread:$0]  (!%p634_p4), %s694_s0, 256, %s169_s20, [#allocation8], %s583_s23, %s583_s23, %s584_s24  }
  0x17   : > { %p176_p1 = scmp.lt.s32.totalorder %s580_s14, 3 }
  0x19   : > { %p177_p2 = pnand %p430_p5, %p176_p1 }
  0x1a   : > { %p458_p3 = scmp.eq.s32.totalorder (!%p177_p2), %s425_s15, 0 }
  0x1b   : > { %180 = sbr.rel (%p177_p2) target bundleno = 387 (0x183), region = 32 }
  0x20   : > { %563 = dma.done.wait (%p458_p3), [#allocation8], 256  }
  0x21   : > { %565 = vsyncadd (%p458_p3), [#allocation8], 4294967040  ;;  %p432_p6 = scmp.ne.s32.totalorder %s572_s12, 0 }
  0x23   : > { %217 = sbr.rel (%p432_p6) target bundleno = 195 (0xc3), region = 40 }
  0x28   : > { %v225_v0 = vld [vmem:[#allocation7] sm:$0xff]  ;;  %v226_v1 = vld [vmem:[#allocation7 + $0x8] sm:$0xff]  ;;  %vm236_vm0 = vcmask 1043456   ;;  %vm222_vm1 = vcmask 3072   ;;  %v585_v22 = vmov 0.0  }
  0x29   : > { %228 = vst [vmem:[#allocation2 + $0x8] sm:$0xff] %v226_v1  ;;  %v232_v2 = vcombine.high %v225_v0, %v225_v0  ;;  %v233_v3 = vcombine.high %v226_v1, %v226_v1  ;;  %v237_v4 = vsel %vm236_vm0, %v225_v0, 0.0  ;;  %227 = vst [vmem:[#allocation2] sm:$0xff] %v225_v0  ;;  %v250_v5 = vmul.f32 %v225_v0, %v225_v0 }
  0x2a   : > { %v251_v6 = vmul.f32 %v226_v1, %v226_v1  ;;  %v240_v8 = vsel %vm236_vm0, %v226_v1, 0.0  ;;  %223 = vst.msk [vmem:[#allocation3] sm:$0xf] %vm222_vm1, %v585_v22  ;;  %224 = vst.msk [vmem:[#allocation4] sm:$0xf] %vm222_vm1, %v585_v22 }
  0x2b   : > { %v238_v7 = vsel %vm236_vm0, %v232_v2, 0.0  ;;  %v254_v10 = vcombine.high %v250_v5, %v250_v5  ;;  %v258_v12 = vsel %vm236_vm0, %v250_v5, 0.0  ;;  %v242_v13 = vsel %vm236_vm0, %v233_v3, 0.0 }
  0x2c   : > { %v239_v9 = vadd.f32 %v238_v7, %v237_v4  ;;  %v255_v11 = vcombine.high %v251_v6, %v251_v6  ;;  %v261_v16 = vsel %vm236_vm0, %v251_v6, 0.0 }
  0x2d   : > { %v259_v15 = vsel %vm236_vm0, %v254_v10, 0.0 }
  0x2e   : > { %v241_v14 = vadd.f32 %v240_v8, %v239_v9  ;;  %v260_v17 = vadd.f32 %v259_v15, %v258_v12  ;;  %v263_v19 = vsel %vm236_vm0, %v255_v11, 0.0 }
  0x30   : > { %v243_v18 = vadd.f32 %v242_v13, %v241_v14  ;;  %v262_v20 = vadd.f32 %v261_v16, %v260_v17 }
  0x31   : > { %v229_v23 = vld [vmem:[#allocation3] sm:$0xf]  ;;  %v249_v26 = vld [vmem:[#allocation4] sm:$0xf] }
  0x32   : > { %244 = vadd.xlane.f32.xlu0 %v243_v18  ;;  %v264_v21 = vadd.f32 %v263_v19, %v262_v20 }
  0x36   : > { %265 = vadd.xlane.f32.xlu0 %v264_v21 }
  0xbb   : > { %v245_v24 = vpop.xlane.xlu0 %244 }
  0xbc   : > { %v246_v25 = vadd.f32 %v245_v24, %v229_v23 }
  0xbe   : > { %248 = vst.msk [vmem:[#allocation3] sm:$0xf] %vm222_vm1, %v246_v25 }
  0xbf   : > { %v266_v27 = vpop.xlane.xlu0 %265 }
  0xc0   : > { %v267_v28 = vadd.f32 %v266_v27, %v249_v26 }
  0xc2   : > { %268 = vst.msk [vmem:[#allocation4] sm:$0xf] %vm222_vm1, %v267_v28 }
  0xc3 PF: > { %p269_p4 = scmp.eq.s32.totalorder %s572_s12, 1 }
  0xc4   : > { %v282_v37 = vld [vmem:[%s695_s1] sm:$0xf] (%p269_p4)  ;;  %vm286_vm2 = vcmask (%p269_p4), 3072  }
  0xc5   : > { %274 = sbr.rel (!%p269_p4) target bundleno = 231 (0xe7), region = 48  ;;  %v275_v29 = vld [vmem:[#allocation3] sm:$0xf] (%p269_p4)  ;;  %v288_v40 = vld [vmem:[%s696_s2] sm:$0xf] (%p269_p4) }
  0xc6   : > { %v276_v31 = vmul.f32 (%p269_p4), 0.001953125, %v275_v29 }
  0xc8   : > { %v279_v33 = vmul.f32 (%p269_p4), %v276_v31, %v276_v31 }
  0xc9   : > { %v277_v30 = vld [vmem:[#allocation4] sm:$0xf] (%p269_p4) }
  0xca   : > { %v278_v32 = vmul.f32 0.001953125, %v277_v30 }
  0xcc   : > { %v280_v34 = vsub.f32 %v278_v32, %v279_v33 }
  0xce   : > { %v281_v35 = vmax.f32 %v280_v34, 0.0 }
  0xd0   : > { %v283_v36 = vadd.f32 1e-05, %v281_v35 }
  0xd2   : > { %497 = vrsqrt.f32 %v283_v36 }
  0xdf   : > { %v498_v38 = vpop.eup %497 }
  0xe0   : > { %v285_v39 = vmul.f32 %v498_v38, %v282_v37 }
  0xe2   : > { %287 = vst.msk [vmem:[#allocation5] sm:$0xf] %vm286_vm2, %v285_v39  ;;  %v289_v41 = vmul.f32 %v285_v39, %v276_v31 }
  0xe4   : > { %v290_v42 = vsub.f32 %v288_v40, %v289_v41 }
  0xe6   : > { %291 = vst.msk [vmem:[#allocation6] sm:$0xf] %vm286_vm2, %v290_v42 }
  0xe7 PF: > { %p434_p5 = scmp.ne.s32.totalorder %s572_s12, 1 }
  0xe9   : > { %294 = sbr.rel (%p434_p5) target bundleno = 373 (0x175), region = 52 }
  0xee   : > { %v297_v43 = vld [vmem:[#allocation5] sm:$0xf]  ;;  %v586_v44 = vmov 0   ;;  %v312_v45 = vld [vmem:[#allocation6] sm:$0xf]  ;;  %v305_v48 = vlaneseq  ;;  %v295_v54 = vld [vmem:[#allocation2] sm:$0xff] }
  0xef   : > { %499 = vset.pattern.permute.xlu0 %v586_v44  ;;  %v587_v46 = vmov 839922192   ;;  %v296_v55 = vld [vmem:[#allocation2 + $0x8] sm:$0xff] }
  0xf0   : > { %300 = vperm.xlu0 %499, %v297_v43   ;;  %v303_v47 = vunpack.c.l.s4 %v587_v46  ;;  %v306_v50 = vshrl.u32 %v305_v48, 7 }
  0xf2   : > { %v304_v49 = vunpack.c.0.s8 %v303_v47 }
  0xf4   : > { %315 = vperm.xlu0 %499, %v312_v45   ;;  %v307_v51 = vsub.s32 %v304_v49, %v306_v50 }
 0x16b   : > { %v301_v52 = vpop.permute.xlu0 %300 }
 0x16c   : > { %v308_v53 = vrot.slane %v301_v52, %v307_v51 }
 0x16e   : > { %v310_v57 = vmul.f32 %v308_v53, %v295_v54  ;;  %v311_v58 = vmul.f32 %v308_v53, %v296_v55 }
 0x16f   : > { %v316_v56 = vpop.permute.xlu0 %315 }
 0x170   : > { %v323_v59 = vrot.slane %v316_v56, %v307_v51 }
 0x172   : > { %v325_v60 = vadd.f32 %v323_v59, %v310_v57  ;;  %v326_v61 = vadd.f32 %v323_v59, %v311_v58 }
 0x174   : > { %327 = vst [vmem:[#allocation10] sm:$0xff] %v325_v60  ;;  %328 = vst [vmem:[#allocation10 + $0x8] sm:$0xff] %v326_v61 }
 0x175 PF: > { %p670_p7 = scmp.eq.s32.totalorder %s425_s15, 1  ;;  %s588_s5 = smov [#allocation10]  }
 0x176   : > { %s344_s6 = sshll.u32 %s588_s5, 4  ;;  %s345_s6 = int_to_ptr.vmem [resolvable:$true] %s344_s6 }
 0x177   : > { %s526_s7 = scalar_lea.vmem %s345_s6, 256  ;;  %s532_s8 = scalar_lea.vmem %s345_s6, 512 }
 0x178   : > { %p527_p8 = scmp.ne.s32.totalorder %s345_s6, %s526_s7  ;;  %p533_p11 = scmp.lt.s32.totalorder %s345_s6, %s345_s6 }
 0x179   : > { %p534_p12 = scmp.lt.s32.totalorder %s532_s8, %s526_s7 }
 0x17a   : > { %p528_p9 = pnand %p527_p8, %p670_p7 }
 0x17b   : > { %p535_p13 = por %p534_p12, %p533_p11 }
 0x17c   : > { %p529_p10 = pneg %p528_p9 }
 0x17e   : > { %p536_p1 = pnand %p535_p13, %p529_p10 }
 0x180   : > { %539 = shalt.err (!%p536_p1)
}
 0x181   : > { %s589_s9 = smov 128   ;;  %s590_s10 = smov 8  }
 0x182   : > { %445 = dma.vmem_to_hbm [thread:$0]  (%p670_p7), %s345_s6, 256, %s697_s3, [#allocation9], %s589_s9, %s589_s9, %s590_s10  }
 0x183 PF: > { %p461_p2 = scmp.eq.s32.totalorder %s426_s16, 1 }
 0x185   : > { %p453_p3 = pnand %p461_p2, %p428_p0 }
 0x187   : > { %p454_p6 = pneg %p453_p3 }
 0x189   : > { %567 = dma.done.wait (%p454_p6), [#allocation9], 256  }
 0x18a   : > { %569 = vsyncadd (%p454_p6), [#allocation9], 4294967040  ;;  %s19_s14 = sadd.s32 1, %s580_s14   ;;  %s700_s12 = smov %s576_s13 }
 0x18b   : > { %p16_p4 = scmp.ge.s32.totalorder %s19_s14, 4   ;;  %s701_s13 = smov %s703_s17 }
 0x18d   :  { %18 = sbr.rel (!%p16_p4) target bundleno = 5 (0x5), region = 93 }
 0x192   :  { %365 = vsyncpa [#allocation8], 1 }
 0x193   :  { %367 = vsyncpa [#allocation8 + $0x1], 1 }
 0x194   :  { %368 = vsyncpa [#allocation9], 1 }
 0x195   :  { %370 = vsyncpa [#allocation9 + $0x1], 1 }

</bundles_post_ra>
